<compile_context>
chip_gen: v7x
topology: tpu7x:2x2x1
jax: 0.10.0
libtpu: 0.0.40
codegen_flags: <defaults>
</compile_context>

<pallas_src>
import numpy as np

import jax
import jax.numpy as jnp
from jax.experimental import pallas as pl
from jax.experimental.pallas import tpu as pltpu


# Lane-dense last-dim candidates (large multiples of the 128-lane vreg width).
_LANE_WIDTHS = (2048, 1024, 512, 256, 128)
# Target ~2 MiB per tile; with input+output double-buffering that is ~8 MiB
# of VMEM: safe on v5e (16 MiB scoped default), v6e (32 MiB), v7x (64 MiB).
_TARGET_TILE_BYTES = 2 * 1024 * 1024
_MIN_TILE_ROWS = 8          # sublane granularity
_MAX_TILE_ROWS = 4096


def _identity_kernel(x_ref, o_ref):
    # Elementwise pass-through on the VPU (the entire "forward" of the ABC).
    o_ref[...] = x_ref[...]


def _pick_tile_rows(rows: int, cols: int, itemsize: int) -> int:
    """Largest multiple-of-8 row tile whose tile is ~<= _TARGET_TILE_BYTES."""
    rows_for_target = max(_MIN_TILE_ROWS, _TARGET_TILE_BYTES // max(cols * itemsize, 1))
    tile_rows = min(rows_for_target, _MAX_TILE_ROWS, rows)
    if tile_rows >= rows:
        return rows                    # full-extent block (always legal)
    tile_rows -= tile_rows % _MIN_TILE_ROWS      # keep (8,128) rule satisfied
    return max(tile_rows, _MIN_TILE_ROWS)


def _pallas_identity_2d(x2d: jax.Array) -> jax.Array:
    rows, cols = x2d.shape
    tile_rows = _pick_tile_rows(rows, cols, x2d.dtype.itemsize)
    grid = (pl.cdiv(rows, tile_rows),)
    return pl.pallas_call(
        _identity_kernel,
        out_shape=jax.ShapeDtypeStruct((rows, cols), x2d.dtype),
        grid=grid,
        in_specs=[pl.BlockSpec((tile_rows, cols), lambda i: (i, 0))],
        out_specs=pl.BlockSpec((tile_rows, cols), lambda i: (i, 0)),
        # Output aliases the input buffer: the identity writes back in place.
        input_output_aliases={0: 0},
        compiler_params=pltpu.CompilerParams(
            # Row tiles are independent -> shard across TensorCores (v7x).
            dimension_semantics=("parallel",),
        ),
    )(x2d)


def _lane_dense_2d_shape(shape):
    """Pick a (rows, cols) view with cols a large multiple of 128 if possible."""
    total = 1
    for d in shape:
        total *= int(d)
    for width in _LANE_WIDTHS:
        if total % width == 0 and total // width >= 1:
            return total // width, width
    # Fallback: keep the original last dim (lane-sparse, but always valid:
    # the block's last dim equals the full array dim).
    last = int(shape[-1]) if len(shape) else 1
    return total // last, last


@jax.jit
def _forward_impl(x: jax.Array) -> jax.Array:
    rows, cols = _lane_dense_2d_shape(x.shape)
    x2d = x.reshape(rows, cols)          # layout plumbing only (lane-dense slab)
    y2d = _pallas_identity_2d(x2d)
    return y2d.reshape(x.shape)


class BaseModelPallas:
    """JAX/Pallas counterpart of the abstract PyTorch BaseModel.

    No parameters (the reference __init__ registers none). `forward` routes
    the tensor through a Pallas TPU kernel preserving shape and dtype.
    """

    def __init__(self, input_size=(4, 16, 16)):
        self._input_size = tuple(input_size)   # (channels, height, width)
        self._params = {}                      # BaseModel defines no weights
        self._frozen = False

    # ---- forward (the hot path, runs in the Pallas kernel) ----
    def forward(self, x: jax.Array) -> jax.Array:
        return _forward_impl(x)

    def __call__(self, x: jax.Array) -> jax.Array:
        return self.forward(x)

    # ---- non-tensor utilities mirrored from BaseModel ----
    def get_input_size(self):
        return self._input_size

    def count_parameters(self) -> int:
        if self._frozen:
            return 0
        return int(sum(int(p.size) for p in self._params.values()))

    def freeze_parameters(self) -> None:
        self._frozen = True

    def unfreeze_parameters(self) -> None:
        self._frozen = False

    def to_device(self, device=None) -> None:
        # JAX arrays are device-placed by the runtime; nothing to move here.
        pass


if __name__ == "__main__":
    key = jax.random.PRNGKey(0)
    # Small shapes consistent with get_input_size() -> (channels, height, width)
    x = jax.random.normal(key, (2, 4, 16, 16), dtype=jnp.float32)
    x_host = np.asarray(x)                 # host copy for the correctness check

    model = BaseModelPallas(input_size=(4, 16, 16))
    y = model(x)
    y = jax.block_until_ready(y)

    assert y.shape == x.shape and y.dtype == x.dtype
    np.testing.assert_array_equal(np.asarray(y), x_host)
    assert model.count_parameters() == 0

    print("KERNEL_OK")
</pallas_src>

<mosaic_0001>
module attributes {stable_mosaic.version = 11 : i64} {
  func.func @_identity_kernel(%arg0: i32, %arg1: memref<1x2048xf32, #tpu.memory_space<vmem>>, %arg2: memref<1x2048xf32, #tpu.memory_space<vmem>>) attributes {dimension_semantics = [#tpu.dimension_semantics<parallel>], iteration_bounds = array<i64: 1>, scalar_prefetch = 0 : i64, scratch_operands = 0 : i64, tpu.core_type = #tpu.core_type<tc>, window_params = [{transform_indices = @transform_0, window_bounds = array<i64: 1, 2048>}, {transform_indices = @transform_1, window_bounds = array<i64: 1, 2048>}]} {
    %c0 = arith.constant 0 : index
    %c0_0 = arith.constant 0 : index
    %0 = vector.load %arg1[%c0, %c0_0] : memref<1x2048xf32, #tpu.memory_space<vmem>>, vector<1x2048xf32>
    %c0_1 = arith.constant 0 : index
    %c0_2 = arith.constant 0 : index
    %1 = vector.load %arg2[%c0_1, %c0_2] : memref<1x2048xf32, #tpu.memory_space<vmem>>, vector<1x2048xf32>
    tpu.vector_store %arg2[%c0_1, %c0_2], %0 {strides = array<i32>} : memref<1x2048xf32, #tpu.memory_space<vmem>>, vector<1x2048xf32>,
    return
  }
  func.func @transform_0(%arg0: i32) -> (i32, i32) {
    %c0_i32 = arith.constant 0 : i32
    %c0_i32_0 = arith.constant 0 : i32
    return %arg0, %c0_i32 : i32, i32
  }
  func.func @transform_1(%arg0: i32) -> (i32, i32) {
    %c0_i32 = arith.constant 0 : i32
    %c0_i32_0 = arith.constant 0 : i32
    return %arg0, %c0_i32 : i32, i32
  }
}

</mosaic_0001>

<bundles_post_ra>
// kernel: _forward_impl.1
= control target key start
LH: loop header
LB: loop body
LE: loop exit
PB: predicated region body
PF: predicated region fallthrough
CT: control target
= control target key end

     0   :  { %s38_s0 = inlined_call_operand.vmem [shape: f32[1,2048], index: 0, kind: input, shape index: {}, may-alias: {0,1}]   ;;  %s39_s1 = inlined_call_operand.vmem [shape: f32[1,2048], index: 1, kind: output, shape index: {}, may-alias: {0,1}]  }
   0x1   :  { %v8_v0 = vld [vmem:[%s38_s0] sm:$0xff]  ;;  %v9_v1 = vld [vmem:[%s38_s0 + $0x8] sm:$0xff] }
   0x2   :  { %10 = vst [vmem:[%s39_s1] sm:$0xff] %v8_v0  ;;  %11 = vst [vmem:[%s39_s1 + $0x8] sm:$0xff] %v9_v1 }

</bundles_post_ra>
